<compile_context>
chip_gen: v6e
topology: v6e:2x2x1
jax: 0.10.0
libtpu: 0.0.40
codegen_flags: <defaults>
</compile_context>

<pallas_src>
import jax
import jax.numpy as jnp
from jax.experimental import pallas as pl
from jax.experimental.pallas import tpu as pltpu


_LANES = 128
_SUBLANES = 8
_MAX_BLOCK_ROWS = 1024          # (1024, 128) f32 = 512 KiB per operand plane
_PALLAS_MIN_BATCH = 1 << 17     # below this the fused XLA path wins


def _nrtl_kernel(abp_ref, t_ref, xa_ref, xw_ref, ga_ref, gw_ref):
    # abp_ref: (3, block_rows, 128) = [alpha_raw, b_12, b_21]
    # t_ref / xa_ref / xw_ref / ga_ref / gw_ref: (block_rows, 128)
    alpha_raw = abp_ref[0]
    b_12 = abp_ref[1]
    b_21 = abp_ref[2]
    temperature = t_ref[...]
    x_a = xa_ref[...]
    x_w = xw_ref[...]

    alpha_min = 0.2
    alpha_max = 0.47
    # sigmoid(x) == 0.5 * (1 + tanh(x/2)): one EUP op instead of exp + divide.
    sig = 0.5 * (1.0 + jnp.tanh(0.5 * alpha_raw))
    alpha = alpha_min * (1.0 + sig * (0.1 * (alpha_max / alpha_min)))

    R = 62.36367
    t_kelvin = temperature + 273.15
    inv_rt = 1.0 / (R * t_kelvin)          # shared reciprocal (divide #1)
    tau_12 = b_12 * inv_rt
    tau_21 = b_21 * inv_rt
    G_12 = jnp.exp(-tau_12 * alpha)
    G_21 = jnp.exp(-tau_21 * alpha)

    inv_d21 = 1.0 / (x_a + x_w * G_21)     # divide #2, reused in both outputs
    inv_d12 = 1.0 / (x_w + x_a * G_12)     # divide #3, reused in both outputs

    g21i = G_21 * inv_d21
    g12i = G_12 * inv_d12

    ga_ref[...] = (x_w * x_w) * (tau_21 * g21i * g21i + tau_12 * g12i * inv_d12)
    gw_ref[...] = (x_a * x_a) * (tau_12 * g12i * g12i + tau_21 * g21i * inv_d21)


def _nrtl_xla(x_in, temperature, mole_frac_amine, mole_frac_water):
    """Fused pure-XLA path for small batches (identical math)."""
    alpha, b_12, b_21 = x_in[:, 0], x_in[:, 1], x_in[:, 2]
    alpha_min, alpha_max = 0.2, 0.47
    alpha = alpha_min * (1.0 + jax.nn.sigmoid(alpha) / 10.0 * (alpha_max / alpha_min))
    R = 62.36367
    t = temperature + 273.15
    tau_12 = b_12 / (R * t)
    tau_21 = b_21 / (R * t)
    G_12 = jnp.exp(-tau_12 * alpha)
    G_21 = jnp.exp(-tau_21 * alpha)
    x_a, x_w = mole_frac_amine, mole_frac_water
    ga = x_w ** 2 * (tau_21 * (G_21 / (x_a + x_w * G_21)) ** 2
                     + tau_12 * G_12 / (x_w + x_a * G_12) ** 2)
    gw = x_a ** 2 * (tau_12 * (G_12 / (x_w + x_a * G_12)) ** 2
                     + tau_21 * G_21 / (x_a + x_w * G_21) ** 2)
    return ga, gw


def _round_up(n, m):
    return ((n + m - 1) // m) * m


def nrtl_equation_layer(x_in, temperature, mole_frac_amine, mole_frac_water,
                        use_pallas=None):
    """x_in: (B, >=3) float32 (cols = alpha_raw, b_12, b_21);
    temperature / mole fractions: (B,) float32.
    Returns (ln_gamma_amine, ln_gamma_water), each (B,)."""
    B = x_in.shape[0]
    f32 = jnp.float32

    if use_pallas is None:
        use_pallas = B >= _PALLAS_MIN_BATCH
    if not use_pallas:
        return _nrtl_xla(x_in.astype(f32), temperature.astype(f32),
                         mole_frac_amine.astype(f32), mole_frac_water.astype(f32))

    # --- balanced 2-D (sublane x lane) tiling of the batch ---
    rows = max(pl.cdiv(B, _LANES), 1)
    # >=2 blocks when there is enough work (shards across v7x's 2 TCs; the
    # extra ~0.35us grid step is noise on 1-TC chips), and blocks balanced so
    # an awkward B never pays for a nearly-all-pad tail block.
    min_blocks = 2 if rows >= 2 * _SUBLANES else 1
    num_blocks = max(pl.cdiv(rows, _MAX_BLOCK_ROWS), min_blocks)
    block_rows = _round_up(pl.cdiv(rows, num_blocks), _SUBLANES)
    num_blocks = pl.cdiv(rows, block_rows)
    total_rows = num_blocks * block_rows
    padded = total_rows * _LANES
    pad = padded - B

    # One strided pass over x_in's coefficient columns (no per-column gathers,
    # no 6-plane stack).  Zero-fill in the pad region is harmless for these.
    abp = x_in[:, :3].astype(f32).T                    # (3, B)
    if pad:
        abp = jnp.pad(abp, ((0, 0), (0, pad)))
    abp = abp.reshape(3, total_rows, _LANES)

    def plane(v, fill):
        v = v.astype(f32).reshape(-1)
        if pad:
            # Fill values chosen so discarded lanes never divide by zero.
            v = jnp.pad(v, (0, pad), constant_values=fill)
        return v.reshape(total_rows, _LANES)

    temp_p = plane(temperature, 25.0)
    xa_p = plane(mole_frac_amine, 0.5)
    xw_p = plane(mole_frac_water, 0.5)

    abp_spec = pl.BlockSpec((3, block_rows, _LANES), lambda i: (0, i, 0))
    plane_spec = pl.BlockSpec((block_rows, _LANES), lambda i: (i, 0))

    ga, gw = pl.pallas_call(
        _nrtl_kernel,
        out_shape=(
            jax.ShapeDtypeStruct((total_rows, _LANES), f32),
            jax.ShapeDtypeStruct((total_rows, _LANES), f32),
        ),
        grid=(num_blocks,),
        in_specs=[abp_spec, plane_spec, plane_spec, plane_spec],
        out_specs=(plane_spec, plane_spec),
        compiler_params=pltpu.CompilerParams(
            dimension_semantics=("parallel",)),
    )(abp, temp_p, xa_p, xw_p)

    ga = ga.reshape(padded)
    gw = gw.reshape(padded)
    if pad:
        ga = ga[:B]
        gw = gw[:B]
    return ga, gw


def _reference(x_in, temperature, mole_frac_amine, mole_frac_water):
    return _nrtl_xla(x_in, temperature, mole_frac_amine, mole_frac_water)


def _make_inputs(key, B):
    k1, k2, k3, k4 = jax.random.split(key, 4)
    x_in = jnp.concatenate(
        [
            jax.random.normal(k1, (B, 1), dtype=jnp.float32),          # alpha raw
            200.0 * jax.random.normal(k2, (B, 2), dtype=jnp.float32),  # b_12, b_21
        ],
        axis=1,
    )
    temperature = 25.0 + 50.0 * jax.random.uniform(k3, (B,), dtype=jnp.float32)
    mole_frac_amine = jax.random.uniform(k4, (B,), dtype=jnp.float32) * 0.5 + 0.1
    mole_frac_water = 1.0 - mole_frac_amine
    return x_in, temperature, mole_frac_amine, mole_frac_water


if __name__ == "__main__":
    key = jax.random.PRNGKey(0)
    k_small, k_mid, k_multi = jax.random.split(key, 3)

    ok = True
    # Small batch, a non-128-multiple batch (padding + lane-dense store path),
    # and a batch big enough to produce a multi-block (2-TC) grid.
    for k, B in ((k_small, 8), (k_mid, 300), (k_multi, 4096)):
        x_in, temp, x_a, x_w = _make_inputs(k, B)
        ga, gw = nrtl_equation_layer(x_in, temp, x_a, x_w, use_pallas=True)
        jax.block_until_ready((ga, gw))
        ga_ref, gw_ref = _reference(x_in, temp, x_a, x_w)
        ok &= bool(jnp.allclose(ga, ga_ref, rtol=1e-5, atol=1e-6))
        ok &= bool(jnp.allclose(gw, gw_ref, rtol=1e-5, atol=1e-6))

    assert ok, "Pallas NRTL kernel mismatch vs reference"
    print("KERNEL_OK")
</pallas_src>

<mosaic_0001>
module attributes {stable_mosaic.version = 11 : i64} {
  func.func @_nrtl_kernel(%arg0: i32, %arg1: memref<3x8x128xf32, #tpu.memory_space<vmem>>, %arg2: memref<8x128xf32, #tpu.memory_space<vmem>>, %arg3: memref<8x128xf32, #tpu.memory_space<vmem>>, %arg4: memref<8x128xf32, #tpu.memory_space<vmem>>, %arg5: memref<8x128xf32, #tpu.memory_space<vmem>>, %arg6: memref<8x128xf32, #tpu.memory_space<vmem>>) attributes {dimension_semantics = [#tpu.dimension_semantics<parallel>], iteration_bounds = array<i64: 1>, scalar_prefetch = 0 : i64, scratch_operands = 0 : i64, tpu.core_type = #tpu.core_type<tc>, window_params = [{transform_indices = @transform_0, window_bounds = array<i64: 3, 8, 128>}, {transform_indices = @transform_1, window_bounds = array<i64: 8, 128>}, {transform_indices = @transform_2, window_bounds = array<i64: 8, 128>}, {transform_indices = @transform_3, window_bounds = array<i64: 8, 128>}, {transform_indices = @transform_4, window_bounds = array<i64: 8, 128>}, {transform_indices = @transform_5, window_bounds = array<i64: 8, 128>}]} {
    %c0 = arith.constant 0 : index
    %c0_0 = arith.constant 0 : index
    %c0_1 = arith.constant 0 : index
    %0 = vector.load %arg1[%c0, %c0_0, %c0_1] : memref<3x8x128xf32, #tpu.memory_space<vmem>>, vector<1x8x128xf32>
    %1 = vector.shape_cast %0 : vector<1x8x128xf32> to vector<8x128xf32>
    %c1 = arith.constant 1 : index
    %c0_2 = arith.constant 0 : index
    %c0_3 = arith.constant 0 : index
    %2 = vector.load %arg1[%c1, %c0_2, %c0_3] : memref<3x8x128xf32, #tpu.memory_space<vmem>>, vector<1x8x128xf32>
    %3 = vector.shape_cast %2 : vector<1x8x128xf32> to vector<8x128xf32>
    %c2 = arith.constant 2 : index
    %c0_4 = arith.constant 0 : index
    %c0_5 = arith.constant 0 : index
    %4 = vector.load %arg1[%c2, %c0_4, %c0_5] : memref<3x8x128xf32, #tpu.memory_space<vmem>>, vector<1x8x128xf32>
    %5 = vector.shape_cast %4 : vector<1x8x128xf32> to vector<8x128xf32>
    %c0_6 = arith.constant 0 : index
    %c0_7 = arith.constant 0 : index
    %6 = vector.load %arg2[%c0_6, %c0_7] : memref<8x128xf32, #tpu.memory_space<vmem>>, vector<8x128xf32>
    %c0_8 = arith.constant 0 : index
    %c0_9 = arith.constant 0 : index
    %7 = vector.load %arg3[%c0_8, %c0_9] : memref<8x128xf32, #tpu.memory_space<vmem>>, vector<8x128xf32>
    %c0_10 = arith.constant 0 : index
    %c0_11 = arith.constant 0 : index
    %8 = vector.load %arg4[%c0_10, %c0_11] : memref<8x128xf32, #tpu.memory_space<vmem>>, vector<8x128xf32>
    %cst = arith.constant 5.000000e-01 : f32
    %9 = vector.broadcast %cst : f32 to vector<8x128xf32>
    %10 = arith.mulf %9, %1 : vector<8x128xf32>
    %11 = math.tanh %10 : vector<8x128xf32>
    %cst_12 = arith.constant 1.000000e+00 : f32
    %12 = vector.broadcast %cst_12 : f32 to vector<8x128xf32>
    %13 = arith.addf %12, %11 : vector<8x128xf32>
    %cst_13 = arith.constant 5.000000e-01 : f32
    %14 = vector.broadcast %cst_13 : f32 to vector<8x128xf32>
    %15 = arith.mulf %14, %13 : vector<8x128xf32>
    %cst_14 = arith.constant 2.350000e-01 : f32
    %16 = vector.broadcast %cst_14 : f32 to vector<8x128xf32>
    %17 = arith.mulf %15, %16 : vector<8x128xf32>
    %cst_15 = arith.constant 1.000000e+00 : f32
    %18 = vector.broadcast %cst_15 : f32 to vector<8x128xf32>
    %19 = arith.addf %18, %17 : vector<8x128xf32>
    %cst_16 = arith.constant 2.000000e-01 : f32
    %20 = vector.broadcast %cst_16 : f32 to vector<8x128xf32>
    %21 = arith.mulf %20, %19 : vector<8x128xf32>
    %cst_17 = arith.constant 2.731500e+02 : f32
    %22 = vector.broadcast %cst_17 : f32 to vector<8x128xf32>
    %23 = arith.addf %6, %22 : vector<8x128xf32>
    %cst_18 = arith.constant 62.3636703 : f32
    %24 = vector.broadcast %cst_18 : f32 to vector<8x128xf32>
    %25 = arith.mulf %24, %23 : vector<8x128xf32>
    %cst_19 = arith.constant 1.000000e+00 : f32
    %26 = vector.broadcast %cst_19 : f32 to vector<8x128xf32>
    %27 = arith.divf %26, %25 : vector<8x128xf32>
    %28 = arith.mulf %3, %27 : vector<8x128xf32>
    %29 = arith.mulf %5, %27 : vector<8x128xf32>
    %cst_20 = arith.constant 0.000000e+00 : f32
    %30 = vector.broadcast %cst_20 : f32 to vector<8x128xf32>
    %31 = arith.subf %30, %28 : vector<8x128xf32>
    %32 = arith.mulf %31, %21 : vector<8x128xf32>
    %33 = math.exp %32 : vector<8x128xf32>
    %cst_21 = arith.constant 0.000000e+00 : f32
    %34 = vector.broadcast %cst_21 : f32 to vector<8x128xf32>
    %35 = arith.subf %34, %29 : vector<8x128xf32>
    %36 = arith.mulf %35, %21 : vector<8x128xf32>
    %37 = math.exp %36 : vector<8x128xf32>
    %38 = arith.mulf %8, %37 : vector<8x128xf32>
    %39 = arith.addf %7, %38 : vector<8x128xf32>
    %cst_22 = arith.constant 1.000000e+00 : f32
    %40 = vector.broadcast %cst_22 : f32 to vector<8x128xf32>
    %41 = arith.divf %40, %39 : vector<8x128xf32>
    %42 = arith.mulf %7, %33 : vector<8x128xf32>
    %43 = arith.addf %8, %42 : vector<8x128xf32>
    %cst_23 = arith.constant 1.000000e+00 : f32
    %44 = vector.broadcast %cst_23 : f32 to vector<8x128xf32>
    %45 = arith.divf %44, %43 : vector<8x128xf32>
    %46 = arith.mulf %37, %41 : vector<8x128xf32>
    %47 = arith.mulf %33, %45 : vector<8x128xf32>
    %48 = arith.mulf %8, %8 : vector<8x128xf32>
    %49 = arith.mulf %29, %46 : vector<8x128xf32>
    %50 = arith.mulf %49, %46 : vector<8x128xf32>
    %51 = arith.mulf %28, %47 : vector<8x128xf32>
    %52 = arith.mulf %51, %45 : vector<8x128xf32>
    %53 = arith.addf %50, %52 : vector<8x128xf32>
    %54 = arith.mulf %48, %53 : vector<8x128xf32>
    %c0_24 = arith.constant 0 : index
    %c0_25 = arith.constant 0 : index
    %55 = vector.load %arg5[%c0_24, %c0_25] : memref<8x128xf32, #tpu.memory_space<vmem>>, vector<8x128xf32>
    tpu.vector_store %arg5[%c0_24, %c0_25], %54 {strides = array<i32>} : memref<8x128xf32, #tpu.memory_space<vmem>>, vector<8x128xf32>,
    %56 = arith.mulf %7, %7 : vector<8x128xf32>
    %57 = arith.mulf %28, %47 : vector<8x128xf32>
    %58 = arith.mulf %57, %47 : vector<8x128xf32>
    %59 = arith.mulf %29, %46 : vector<8x128xf32>
    %60 = arith.mulf %59, %41 : vector<8x128xf32>
    %61 = arith.addf %58, %60 : vector<8x128xf32>
    %62 = arith.mulf %56, %61 : vector<8x128xf32>
    %c0_26 = arith.constant 0 : index
    %c0_27 = arith.constant 0 : index
    %63 = vector.load %arg6[%c0_26, %c0_27] : memref<8x128xf32, #tpu.memory_space<vmem>>, vector<8x128xf32>
    tpu.vector_store %arg6[%c0_26, %c0_27], %62 {strides = array<i32>} : memref<8x128xf32, #tpu.memory_space<vmem>>, vector<8x128xf32>,
    return
  }
  func.func @transform_0(%arg0: i32) -> (i32, i32, i32) {
    %c0_i32 = arith.constant 0 : i32
    %c0_i32_0 = arith.constant 0 : i32
    %c0_i32_1 = arith.constant 0 : i32
    return %c0_i32, %arg0, %c0_i32_0 : i32, i32, i32
  }
  func.func @transform_1(%arg0: i32) -> (i32, i32) {
    %c0_i32 = arith.constant 0 : i32
    %c0_i32_0 = arith.constant 0 : i32
    return %arg0, %c0_i32 : i32, i32
  }
  func.func @transform_2(%arg0: i32) -> (i32, i32) {
    %c0_i32 = arith.constant 0 : i32
    %c0_i32_0 = arith.constant 0 : i32
    return %arg0, %c0_i32 : i32, i32
  }
  func.func @transform_3(%arg0: i32) -> (i32, i32) {
    %c0_i32 = arith.constant 0 : i32
    %c0_i32_0 = arith.constant 0 : i32
    return %arg0, %c0_i32 : i32, i32
  }
  func.func @transform_4(%arg0: i32) -> (i32, i32) {
    %c0_i32 = arith.constant 0 : i32
    %c0_i32_0 = arith.constant 0 : i32
    return %arg0, %c0_i32 : i32, i32
  }
  func.func @transform_5(%arg0: i32) -> (i32, i32) {
    %c0_i32 = arith.constant 0 : i32
    %c0_i32_0 = arith.constant 0 : i32
    return %arg0, %c0_i32 : i32, i32
  }
}

</mosaic_0001>

<bundles_post_ra>
// kernel: tpu_custom_call.1
= control target key start
LH: loop header
LB: loop body
LE: loop exit
PB: predicated region body
PF: predicated region fallthrough
CT: control target
= control target key end

     0   :  { %11 = vsyncpa [#allocation3], 0  ;;  %s360_s0 = inlined_call_operand.hbm [shape: f32[3,8,128], index: 0, kind: input, shape index: {}]   ;;  %s361_s1 = inlined_call_operand.hbm [shape: f32[8,128], index: 1, kind: input, shape index: {}]   ;;  %s362_s2 = inlined_call_operand.hbm [shape: f32[8,128], index: 2, kind: input, shape index: {}]   ;;  %s363_s3 = inlined_call_operand.hbm [shape: f32[8,128], index: 3, kind: input, shape index: {}]   ;;  %s364_s4 = inlined_call_operand.hbm [shape: f32[8,128], index: 4, kind: output, shape index: {0}]   ;;  %s365_s5 = inlined_call_operand.hbm [shape: f32[8,128], index: 5, kind: output, shape index: {1}]  }
   0x1   :  { %12 = vsyncpa [#allocation6], 0 }
   0x2   :  { %13 = vsyncpa [#allocation9], 0 }
   0x3   :  { %14 = vsyncpa [#allocation4], 0 }
   0x4   :  { %15 = vsyncpa [#allocation12], 0  ;;  %s304_s18 = smov [#allocation5]   ;;  %s305_s20 = smov [#allocation2]  }
   0x5   :  { %s34_s19 = sshll.u32 %s304_s18, 4  ;;  %s21_s21 = sshll.u32 %s305_s20, 4  ;;  %s35_s19 = int_to_ptr.vmem [resolvable:$true] %s34_s19  ;;  %s22_s21 = int_to_ptr.vmem [resolvable:$true] %s21_s21 }
   0x6   :  { %s182_s22 = scalar_lea.vmem %s35_s19, 128  ;;  %p187_p1 = scmp.lt.s32.totalorder %s35_s19, %s35_s19 }
   0x7   :  { %p183_p0 = scmp.ne.s32.totalorder %s35_s19, %s182_s22  ;;  %p188_p2 = scmp.lt.s32.totalorder %s182_s22, %s182_s22 }
   0x9   :  { %p189_p3 = por %p188_p2, %p187_p1 }
   0xb   :  { %p190_p4 = pnand %p189_p3, %p183_p0 }
   0xd   :  { %193 = shalt.err (!%p190_p4)
}
   0xe   :  { %37 = dma.hbm_to_vmem [thread:$0]  %s361_s1, 128, %s35_s19, [#allocation6]  }
   0xf   :  { %s202_s25 = scalar_lea.vmem %s22_s21, 384  ;;  %p207_p6 = scmp.lt.s32.totalorder %s22_s21, %s22_s21 }
  0x10   :  { %p203_p5 = scmp.ne.s32.totalorder %s22_s21, %s202_s25  ;;  %p208_p7 = scmp.lt.s32.totalorder %s202_s25, %s202_s25 }
  0x12   :  { %p209_p8 = por %p208_p7, %p207_p6 }
  0x14   :  { %p210_p9 = pnand %p209_p8, %p203_p5 }
  0x16   :  { %213 = shalt.err (!%p210_p9)
}
  0x17   :  { %s306_s26 = smov 128   ;;  %s307_s27 = smov 8  }
  0x18   :  { %27 = dma.hbm_to_vmem [thread:$0]  %s360_s0, 384, %s22_s21, [#allocation3], %s306_s26, %s306_s26, %s307_s27  }
  0x19   :  { %s308_s30 = smov [#allocation7]   ;;  %s309_s7 = smov [#allocation8]  }
  0x1a   :  { %s44_s6 = sshll.u32 %s308_s30, 4  ;;  %s54_s8 = sshll.u32 %s309_s7, 4  ;;  %s45_s6 = int_to_ptr.vmem [resolvable:$true] %s44_s6  ;;  %s55_s8 = int_to_ptr.vmem [resolvable:$true] %s54_s8 }
  0x1b   :  { %s222_s1 = scalar_lea.vmem %s45_s6, 128  ;;  %p227_p11 = scmp.lt.s32.totalorder %s45_s6, %s45_s6 }
  0x1c   :  { %p223_p10 = scmp.ne.s32.totalorder %s45_s6, %s222_s1  ;;  %p228_p12 = scmp.lt.s32.totalorder %s222_s1, %s222_s1 }
  0x1e   :  { %p229_p13 = por %p228_p12, %p227_p11 }
  0x20   :  { %p230_p0 = pnand %p229_p13, %p223_p10 }
  0x22   :  { %233 = shalt.err (!%p230_p0)
}
  0x23   :  { %47 = dma.hbm_to_vmem [thread:$0]  %s362_s2, 128, %s45_s6, [#allocation6]  }
  0x24   :  { %s242_s11 = scalar_lea.vmem %s55_s8, 128  ;;  %p247_p2 = scmp.lt.s32.totalorder %s55_s8, %s55_s8 }
  0x25   :  { %p243_p1 = scmp.ne.s32.totalorder %s55_s8, %s242_s11  ;;  %p248_p3 = scmp.lt.s32.totalorder %s242_s11, %s242_s11 }
  0x27   :  { %p249_p4 = por %p248_p3, %p247_p2 }
  0x29   :  { %p250_p5 = pnand %p249_p4, %p243_p1 }
  0x2b   :  { %253 = shalt.err (!%p250_p5)
}
  0x2c   :  { %57 = dma.hbm_to_vmem [thread:$0]  %s363_s3, 128, %s55_s8, [#allocation9]  }
  0x2d   :  { %294 = dma.done.wait [#allocation3], 384  }
  0x2e   :  { %295 = vsyncadd [#allocation3], 4294966912 }
  0x2f   :  { %296 = dma.done.wait [#allocation6], 256  }
  0x30   :  { %297 = vsyncadd [#allocation6], 4294967040 }
  0x31   :  { %298 = dma.done.wait [#allocation9], 128  }
  0x32   :  { %299 = vsyncadd [#allocation9], 4294967168  ;;  %v70_v0 = vld [vmem:[#allocation2] sm:$0xff]  ;;  %v75_v1 = vld [vmem:[#allocation5] sm:$0xff]  ;;  %s310_s2 = smov [#allocation10]   ;;  %s311_s13 = smov [#allocation11]  }
  0x33   :  { %v78_v2 = vmul.f32 0.5, %v70_v0  ;;  %v85_v3 = vadd.f32 273.15, %v75_v1  ;;  %v72_v6 = vld [vmem:[#allocation2 + $0x8] sm:$0xff]  ;;  %v74_v7 = vld [vmem:[#allocation2 + $0x10] sm:$0xff]  ;;  %v76_v22 = vld [vmem:[#allocation7] sm:$0xff] }
  0x34   :  { %v77_v23 = vld [vmem:[#allocation8] sm:$0xff]  ;;  %v117_v40 = vmul.f32 %v76_v22, %v76_v22  ;;  %s129_s3 = sshll.u32 %s310_s2, 4  ;;  %s139_s14 = sshll.u32 %s311_s13, 4  ;;  %s130_s3 = int_to_ptr.vmem [resolvable:$true] %s129_s3  ;;  %s140_s14 = int_to_ptr.vmem [resolvable:$true] %s139_s14 }
  0x35   :  { %162 = vtanh.f32 %v78_v2  ;;  %v86_v4 = vmul.f32 62.36367, %v85_v3  ;;  %v109_v38 = vmul.f32 %v77_v23, %v77_v23  ;;  %s254_s15 = scalar_lea.vmem %s130_s3, 128  ;;  %p259_p7 = scmp.lt.s32.totalorder %s130_s3, %s130_s3 }
  0x36   :  { %p255_p6 = scmp.ne.s32.totalorder %s130_s3, %s254_s15  ;;  %p260_p8 = scmp.lt.s32.totalorder %s254_s15, %s254_s15 }
  0x37   :  { %164 = vrcp.f32 %v86_v4 }
  0x38   :  { %p261_p9 = por %p260_p8, %p259_p7 }
  0x3a   :  { %p262_p10 = pnand %p261_p9, %p255_p6 }
  0x42   :  { %v163_v5 = vpop.eup %162 }
  0x43   :  { %v80_v8 = vadd.f32 1.0, %v163_v5 }
  0x44   :  { %v165_v9 = vpop.eup %164 }
  0x45   :  { %v81_v10 = vmul.f32 0.5, %v80_v8  ;;  %v89_v11 = vmul.f32 %v165_v9, %v72_v6  ;;  %v90_v12 = vmul.f32 %v165_v9, %v74_v7 }
  0x47   :  { %v82_v13 = vmul.f32 0.235, %v81_v10  ;;  %v91_v15 = vsub.f32 0.0, %v89_v11  ;;  %v95_v16 = vsub.f32 0.0, %v90_v12 }
  0x49   :  { %v83_v14 = vadd.f32 1.0, %v82_v13 }
  0x4b   :  { %v84_v17 = vmul.f32 0.2, %v83_v14 }
  0x4d   :  { %v92_v18 = vmul.f32 %v91_v15, %v84_v17  ;;  %v96_v19 = vmul.f32 %v95_v16, %v84_v17 }
  0x4f   :  { %v93_v20 = vmul.f32 1.442695, %v92_v18  ;;  %v97_v21 = vmul.f32 1.442695, %v96_v19 }
  0x51   :  { %166 = vpow2.f32 %v93_v20 }
  0x52   :  { %168 = vpow2.f32 %v97_v21 }
  0x5e   :  { %v167_v24 = vpop.eup %166 }
  0x5f   :  { %v169_v25 = vpop.eup %168  ;;  %v103_v26 = vmul.f32 %v167_v24, %v76_v22 }
  0x60   :  { %v99_v27 = vmul.f32 %v169_v25, %v77_v23 }
  0x61   :  { %v104_v28 = vadd.f32 %v103_v26, %v77_v23 }
  0x62   :  { %v100_v29 = vadd.f32 %v99_v27, %v76_v22 }
  0x63   :  { %170 = vrcp.f32 %v104_v28 }
  0x64   :  { %172 = vrcp.f32 %v100_v29 }
  0x70   :  { %v171_v30 = vpop.eup %170 }
  0x71   :  { %v173_v31 = vpop.eup %172  ;;  %v108_v32 = vmul.f32 %v171_v30, %v167_v24 }
  0x72   :  { %v107_v33 = vmul.f32 %v173_v31, %v169_v25 }
  0x73   :  { %v112_v34 = vmul.f32 %v108_v32, %v89_v11 }
  0x74   :  { %v110_v35 = vmul.f32 %v107_v33, %v90_v12 }
  0x75   :  { %v113_v36 = vmul.f32 %v171_v30, %v112_v34  ;;  %v118_v37 = vmul.f32 %v112_v34, %v108_v32 }
  0x76   :  { %v111_v39 = vmul.f32 %v110_v35, %v107_v33  ;;  %v119_v41 = vmul.f32 %v173_v31, %v110_v35 }
  0x78   :  { %v114_v42 = vadd.f32 %v113_v36, %v111_v39  ;;  %v120_v43 = vadd.f32 %v119_v41, %v118_v37 }
  0x7a   :  { %v115_v44 = vmul.f32 %v114_v42, %v109_v38  ;;  %v121_v45 = vmul.f32 %v120_v43, %v117_v40 }
  0x7c   :  { %116 = vst [vmem:[#allocation10] sm:$0xff] %v115_v44  ;;  %122 = vst [vmem:[#allocation11] sm:$0xff] %v121_v45 }
  0x7d   :  { %265 = shalt.err (!%p262_p10)
}
  0x7e   :  { %132 = dma.vmem_to_hbm [thread:$0]  %s130_s3, 128, %s364_s4, [#allocation4]  }
  0x7f   :  { %s274_s18 = scalar_lea.vmem %s140_s14, 128  ;;  %p279_p12 = scmp.lt.s32.totalorder %s140_s14, %s140_s14 }
  0x80   :  { %p275_p11 = scmp.ne.s32.totalorder %s140_s14, %s274_s18  ;;  %p280_p13 = scmp.lt.s32.totalorder %s274_s18, %s274_s18 }
  0x82   :  { %p281_p0 = por %p280_p13, %p279_p12 }
  0x84   :  { %p282_p1 = pnand %p281_p0, %p275_p11 }
  0x86   :  { %285 = shalt.err (!%p282_p1)
}
  0x87   :  { %142 = dma.vmem_to_hbm [thread:$0]  %s140_s14, 128, %s365_s5, [#allocation12]  }
  0x88   :  { %300 = dma.done.wait [#allocation4], 128  }
  0x89   :  { %301 = vsyncadd [#allocation4], 4294967168 }
  0x8a   :  { %302 = dma.done.wait [#allocation12], 128  }
  0x8b   :  { %303 = vsyncadd [#allocation12], 4294967168 }
  0x8c   :  { %149 = vsyncpa [#allocation3], 1 }
  0x8d   :  { %150 = vsyncpa [#allocation6], 1 }
  0x8e   :  { %151 = vsyncpa [#allocation9], 1 }
  0x8f   :  { %152 = vsyncpa [#allocation4], 1 }
  0x90   :  { %153 = vsyncpa [#allocation12], 1 }

</bundles_post_ra>
